<compile_context>
chip_gen: v7x
topology: tpu7x:2x2x1
jax: 0.10.0
libtpu: 0.0.40
codegen_flags: <defaults>
</compile_context>

<pallas_src>
import jax
import jax.numpy as jnp
from jax import lax
from jax.experimental import pallas as pl
from jax.experimental.pallas import tpu as pltpu


def _round_up(x, m):
    return ((x + m - 1) // m) * m


def _mlp_kernel(text_ref, t_ref, b1_ref, w2_ref, b2_ref, w3_ref, b3_ref,
                w4_ref, b4_ref, o_ref):
    tok = text_ref[...]                       # [TM, L] int32 token ids
    TM, L = tok.shape
    LVp, H2P = t_ref.shape
    Vp = LVp // L
    cdtype = t_ref.dtype

    # Fused embedding-gather + fc1: one lane-aligned one-hot over the padded
    # vocab per position, concatenated along lanes -> single [TM, L*Vp] x
    # [L*Vp, H2P] MXU dot (full systolic-array depth, accumulation in the MXU).
    vocab_iota = lax.broadcasted_iota(jnp.int32, (TM, Vp), 1)
    parts = [(tok[:, l:l + 1] == vocab_iota).astype(cdtype) for l in range(L)]
    onehot = jnp.concatenate(parts, axis=1)   # [TM, L*Vp] in compute dtype

    h = jnp.dot(onehot, t_ref[...],
                preferred_element_type=jnp.float32) + b1_ref[...]
    h = jnp.maximum(h, 0.0)
    # TODO(synk): dropout is a no-op here (inference semantics); training-mode
    # dropout would use pltpu.prng_random_bits + masking.

    h = jnp.dot(h.astype(w2_ref.dtype), w2_ref[...],
                preferred_element_type=jnp.float32) + b2_ref[...]
    h = jnp.maximum(h, 0.0)

    h = jnp.dot(h.astype(w3_ref.dtype), w3_ref[...],
                preferred_element_type=jnp.float32) + b3_ref[...]
    h = jnp.maximum(h, 0.0)

    o_ref[...] = (jnp.dot(h.astype(w4_ref.dtype), w4_ref[...],
                          preferred_element_type=jnp.float32) + b4_ref[...])


def prepare_params(params, max_document_length, *, compute_dtype=jnp.bfloat16):
    """One-time param prep: fold embedding into W1, pad to lane-dense widths,
    cast matmul operands to the compute dtype. Done once, NOT per forward."""
    emb = params["embedding"]            # [V, E] f32
    w1, b1 = params["w1"], params["b1"]  # [L*E, H2], [1, H2]
    w2, b2 = params["w2"], params["b2"]
    w3, b3 = params["w3"], params["b3"]
    w4, b4 = params["w4"], params["b4"]

    V, E = emb.shape
    L = int(max_document_length)
    H2 = w1.shape[1]

    Vp = _round_up(V, 128)
    H2P = _round_up(H2, 128)
    H3P = _round_up(w2.shape[1], 128)
    H4P = _round_up(w3.shape[1], 128)
    OUTP = _round_up(w4.shape[1], 128)

    # Fold embedding into W1 (f32), then pad vocab->Vp and width->H2P and cast.
    w1_3d = w1.reshape(L, E, H2)                       # row l*E+e -> (l, e)
    t = jnp.einsum('ve,leh->lvh', emb, w1_3d)          # [L, V, H2] f32
    t = jnp.pad(t, ((0, 0), (0, Vp - V), (0, H2P - H2)))
    t = t.reshape(L * Vp, H2P).astype(compute_dtype)   # [L*Vp, H2P]

    def pad2(a, rows, cols, dtype):
        return jnp.pad(a.astype(dtype),
                       ((0, rows - a.shape[0]), (0, cols - a.shape[1])))

    prepped = {
        "t": t,
        "b1": pad2(b1, 1, H2P, jnp.float32),
        "w2": pad2(w2, H2P, H3P, compute_dtype),
        "b2": pad2(b2, 1, H3P, jnp.float32),
        "w3": pad2(w3, H3P, H4P, compute_dtype),
        "b3": pad2(b3, 1, H4P, jnp.float32),
        "w4": pad2(w4, H4P, OUTP, compute_dtype),
        "b4": pad2(b4, 1, OUTP, jnp.float32),
        "meta": dict(L=L, Vp=Vp, H2P=H2P, H3P=H3P, H4P=H4P, OUTP=OUTP,
                     out_dim=int(w4.shape[1])),
    }
    return prepped


def mlp_forward(text, prepped):
    """text: [B, L] int32 token ids. Returns [B, output_dim] float32 logits."""
    meta = prepped["meta"]
    L, Vp = meta["L"], meta["Vp"]
    H2P, H3P, H4P, OUTP = meta["H2P"], meta["H3P"], meta["H4P"], meta["OUTP"]
    out_dim = meta["out_dim"]

    t, b1 = prepped["t"], prepped["b1"]
    w2, b2 = prepped["w2"], prepped["b2"]
    w3, b3 = prepped["w3"], prepped["b3"]
    w4, b4 = prepped["w4"], prepped["b4"]

    B = text.shape[0]
    assert text.shape[1] == L

    # Big batch tiles amortize per-grid-step overhead; any batch larger than
    # one tile yields >= 2 grid blocks (v7x megacore sharding via "parallel").
    TM = min(1024, _round_up(B, 8))
    BP = _round_up(B, TM)
    grid = (BP // TM,)

    textp = jnp.pad(text.astype(jnp.int32), ((0, BP - B), (0, 0)))

    full = lambda a: pl.BlockSpec(a.shape, lambda i, _n=a.ndim: (0,) * _n)

    flops = 2 * BP * (L * Vp * H2P + H2P * H3P + H3P * H4P + H4P * OUTP)
    bytes_accessed = (
        textp.size * 4
        + sum(int(a.size) * jnp.dtype(a.dtype).itemsize
              for a in (t, b1, w2, b2, w3, b3, w4, b4))
        + BP * OUTP * 4)

    out = pl.pallas_call(
        _mlp_kernel,
        out_shape=jax.ShapeDtypeStruct((BP, OUTP), jnp.float32),
        grid_spec=pltpu.PrefetchScalarGridSpec(
            num_scalar_prefetch=0,
            grid=grid,
            in_specs=[pl.BlockSpec((TM, L), lambda i: (i, 0)),
                      full(t), full(b1),
                      full(w2), full(b2),
                      full(w3), full(b3),
                      full(w4), full(b4)],
            out_specs=pl.BlockSpec((TM, OUTP), lambda i: (i, 0))),
        compiler_params=pltpu.CompilerParams(
            dimension_semantics=("parallel",),
            vmem_limit_bytes=32 * 1024 * 1024),
        cost_estimate=pl.CostEstimate(flops=flops, transcendentals=0,
                                      bytes_accessed=bytes_accessed),
    )(textp, t, b1, w2, b2, w3, b3, w4, b4)

    return out[:B, :out_dim]


def init_params(key, vocab_size, embed_size, hidden2, hidden3, hidden4,
                output_dim, max_document_length):
    ks = jax.random.split(key, 9)
    in1 = embed_size * max_document_length

    def lin(kw, kb, fan_in, fan_out):
        # Uniform init akin to nn.Linear's default; stored as [in, out].
        bound = 1.0 / jnp.sqrt(fan_in)
        w = jax.random.uniform(kw, (fan_in, fan_out), jnp.float32, -bound, bound)
        b = jax.random.uniform(kb, (1, fan_out), jnp.float32, -bound, bound)
        return w, b

    params = {}
    params["embedding"] = jax.random.normal(ks[0], (vocab_size, embed_size),
                                            jnp.float32)
    params["w1"], params["b1"] = lin(ks[1], ks[2], in1, hidden2)
    params["w2"], params["b2"] = lin(ks[3], ks[4], hidden2, hidden3)
    params["w3"], params["b3"] = lin(ks[5], ks[6], hidden3, hidden4)
    params["w4"], params["b4"] = lin(ks[7], ks[8], hidden4, output_dim)
    return params


if __name__ == "__main__":
    # Small, forward-consistent shapes.
    vocab_size = 50
    embed_size = 16
    max_document_length = 8     # -> flattened feature dim = 128
    hidden2, hidden3, hidden4 = 32, 32, 32
    output_dim = 4
    batch = 2

    key = jax.random.PRNGKey(0)
    k_params, k_text = jax.random.split(key)
    params = init_params(k_params, vocab_size, embed_size, hidden2, hidden3,
                         hidden4, output_dim, max_document_length)

    # One-time prep (fold embedding into W1, pad, cast) — not on the hot path.
    prepped = prepare_params(params, max_document_length)
    prepped = jax.tree_util.tree_map(
        lambda a: jax.block_until_ready(a) if isinstance(a, jax.Array) else a,
        prepped)

    text = jax.random.randint(k_text, (batch, max_document_length), 0,
                              vocab_size, dtype=jnp.int32)
    text_lengths = jnp.full((batch,), max_document_length, jnp.int32)  # unused, as in torch forward

    preds = mlp_forward(text, prepped)
    jax.block_until_ready(preds)

    # Pure-JAX f32 reference (module semantics).  Kernel runs bf16 operands with
    # f32 accumulation, so compare with a correspondingly loose tolerance.
    x = jnp.take(params["embedding"], text, axis=0).reshape(batch, -1)
    h = jnp.maximum(x @ params["w1"] + params["b1"], 0.0)
    h = jnp.maximum(h @ params["w2"] + params["b2"], 0.0)
    h = jnp.maximum(h @ params["w3"] + params["b3"], 0.0)
    ref = h @ params["w4"] + params["b4"]

    assert preds.shape == (batch, output_dim)
    assert jnp.allclose(preds, ref, atol=5e-2, rtol=5e-2), (preds, ref)

    print("KERNEL_OK")
</pallas_src>

<mosaic_0001>
module attributes {stable_mosaic.version = 11 : i64} {
  func.func @_mlp_kernel(%arg0: i32, %arg1: memref<8x8xi32, #tpu.memory_space<vmem>>, %arg2: memref<1024x128xbf16, #tpu.memory_space<vmem>>, %arg3: memref<1x128xf32, #tpu.memory_space<vmem>>, %arg4: memref<128x128xbf16, #tpu.memory_space<vmem>>, %arg5: memref<1x128xf32, #tpu.memory_space<vmem>>, %arg6: memref<128x128xbf16, #tpu.memory_space<vmem>>, %arg7: memref<1x128xf32, #tpu.memory_space<vmem>>, %arg8: memref<128x128xbf16, #tpu.memory_space<vmem>>, %arg9: memref<1x128xf32, #tpu.memory_space<vmem>>, %arg10: memref<8x128xf32, #tpu.memory_space<vmem>>) attributes {dimension_semantics = [#tpu.dimension_semantics<parallel>], iteration_bounds = array<i64: 1>, scalar_prefetch = 0 : i64, scratch_operands = 0 : i64, tpu.core_type = #tpu.core_type<tc>, window_params = [{transform_indices = @transform_0, window_bounds = array<i64: 8, 8>}, {pipeline_mode = #tpu.pipeline_mode<synchronous>, transform_indices = @transform_1, window_bounds = array<i64: 1024, 128>}, {pipeline_mode = #tpu.pipeline_mode<synchronous>, transform_indices = @transform_2, window_bounds = array<i64: 1, 128>}, {pipeline_mode = #tpu.pipeline_mode<synchronous>, transform_indices = @transform_3, window_bounds = array<i64: 128, 128>}, {pipeline_mode = #tpu.pipeline_mode<synchronous>, transform_indices = @transform_4, window_bounds = array<i64: 1, 128>}, {pipeline_mode = #tpu.pipeline_mode<synchronous>, transform_indices = @transform_5, window_bounds = array<i64: 128, 128>}, {pipeline_mode = #tpu.pipeline_mode<synchronous>, transform_indices = @transform_6, window_bounds = array<i64: 1, 128>}, {pipeline_mode = #tpu.pipeline_mode<synchronous>, transform_indices = @transform_7, window_bounds = array<i64: 128, 128>}, {pipeline_mode = #tpu.pipeline_mode<synchronous>, transform_indices = @transform_8, window_bounds = array<i64: 1, 128>}, {transform_indices = @transform_9, window_bounds = array<i64: 8, 128>}]} {
    %c0 = arith.constant 0 : index
    %c0_0 = arith.constant 0 : index
    %0 = vector.load %arg1[%c0, %c0_0] : memref<8x8xi32, #tpu.memory_space<vmem>>, vector<8x8xi32>
    %1 = tpu.iota {dimensions = array<i32: 1>} : vector<8x128xi32>
    %2 = vector.extract_strided_slice %0 {offsets = [0, 0], sizes = [8, 1], strides = [1, 1]} : vector<8x8xi32> to vector<8x1xi32>
    %3 = vector.broadcast %2 : vector<8x1xi32> to vector<8x128xi32>
    %4 = arith.cmpi eq, %3, %1 : vector<8x128xi32>
    %5 = arith.extui %4 : vector<8x128xi1> to vector<8x128xi32>
    %6 = arith.sitofp %5 : vector<8x128xi32> to vector<8x128xf32>
    %7 = arith.truncf %6 : vector<8x128xf32> to vector<8x128xbf16>
    %8 = vector.extract_strided_slice %0 {offsets = [0, 1], sizes = [8, 1], strides = [1, 1]} : vector<8x8xi32> to vector<8x1xi32>
    %9 = vector.broadcast %8 : vector<8x1xi32> to vector<8x128xi32>
    %10 = arith.cmpi eq, %9, %1 : vector<8x128xi32>
    %11 = arith.extui %10 : vector<8x128xi1> to vector<8x128xi32>
    %12 = arith.sitofp %11 : vector<8x128xi32> to vector<8x128xf32>
    %13 = arith.truncf %12 : vector<8x128xf32> to vector<8x128xbf16>
    %14 = vector.extract_strided_slice %0 {offsets = [0, 2], sizes = [8, 1], strides = [1, 1]} : vector<8x8xi32> to vector<8x1xi32>
    %15 = vector.broadcast %14 : vector<8x1xi32> to vector<8x128xi32>
    %16 = arith.cmpi eq, %15, %1 : vector<8x128xi32>
    %17 = arith.extui %16 : vector<8x128xi1> to vector<8x128xi32>
    %18 = arith.sitofp %17 : vector<8x128xi32> to vector<8x128xf32>
    %19 = arith.truncf %18 : vector<8x128xf32> to vector<8x128xbf16>
    %20 = vector.extract_strided_slice %0 {offsets = [0, 3], sizes = [8, 1], strides = [1, 1]} : vector<8x8xi32> to vector<8x1xi32>
    %21 = vector.broadcast %20 : vector<8x1xi32> to vector<8x128xi32>
    %22 = arith.cmpi eq, %21, %1 : vector<8x128xi32>
    %23 = arith.extui %22 : vector<8x128xi1> to vector<8x128xi32>
    %24 = arith.sitofp %23 : vector<8x128xi32> to vector<8x128xf32>
    %25 = arith.truncf %24 : vector<8x128xf32> to vector<8x128xbf16>
    %26 = vector.extract_strided_slice %0 {offsets = [0, 4], sizes = [8, 1], strides = [1, 1]} : vector<8x8xi32> to vector<8x1xi32>
    %27 = vector.broadcast %26 : vector<8x1xi32> to vector<8x128xi32>
    %28 = arith.cmpi eq, %27, %1 : vector<8x128xi32>
    %29 = arith.extui %28 : vector<8x128xi1> to vector<8x128xi32>
    %30 = arith.sitofp %29 : vector<8x128xi32> to vector<8x128xf32>
    %31 = arith.truncf %30 : vector<8x128xf32> to vector<8x128xbf16>
    %32 = vector.extract_strided_slice %0 {offsets = [0, 5], sizes = [8, 1], strides = [1, 1]} : vector<8x8xi32> to vector<8x1xi32>
    %33 = vector.broadcast %32 : vector<8x1xi32> to vector<8x128xi32>
    %34 = arith.cmpi eq, %33, %1 : vector<8x128xi32>
    %35 = arith.extui %34 : vector<8x128xi1> to vector<8x128xi32>
    %36 = arith.sitofp %35 : vector<8x128xi32> to vector<8x128xf32>
    %37 = arith.truncf %36 : vector<8x128xf32> to vector<8x128xbf16>
    %38 = vector.extract_strided_slice %0 {offsets = [0, 6], sizes = [8, 1], strides = [1, 1]} : vector<8x8xi32> to vector<8x1xi32>
    %39 = vector.broadcast %38 : vector<8x1xi32> to vector<8x128xi32>
    %40 = arith.cmpi eq, %39, %1 : vector<8x128xi32>
    %41 = arith.extui %40 : vector<8x128xi1> to vector<8x128xi32>
    %42 = arith.sitofp %41 : vector<8x128xi32> to vector<8x128xf32>
    %43 = arith.truncf %42 : vector<8x128xf32> to vector<8x128xbf16>
    %44 = vector.extract_strided_slice %0 {offsets = [0, 7], sizes = [8, 1], strides = [1, 1]} : vector<8x8xi32> to vector<8x1xi32>
    %45 = vector.broadcast %44 : vector<8x1xi32> to vector<8x128xi32>
    %46 = arith.cmpi eq, %45, %1 : vector<8x128xi32>
    %47 = arith.extui %46 : vector<8x128xi1> to vector<8x128xi32>
    %48 = arith.sitofp %47 : vector<8x128xi32> to vector<8x128xf32>
    %49 = arith.truncf %48 : vector<8x128xf32> to vector<8x128xbf16>
    %50 = tpu.concatenate %7, %13, %19, %25, %31, %37, %43, %49 in 1 : vector<8x128xbf16>, vector<8x128xbf16>, vector<8x128xbf16>, vector<8x128xbf16>, vector<8x128xbf16>, vector<8x128xbf16>, vector<8x128xbf16>, vector<8x128xbf16> -> vector<8x1024xbf16>
    %c0_1 = arith.constant 0 : index
    %c0_2 = arith.constant 0 : index
    %51 = vector.load %arg2[%c0_1, %c0_2] : memref<1024x128xbf16, #tpu.memory_space<vmem>>, vector<1024x128xbf16>
    %cst = arith.constant dense<0.000000e+00> : vector<8x128xf32>
    %52 = tpu.matmul %50, %51, %cst {dimension_numbers = #tpu.dot_dimension_numbers<[1], [0], [0], [1], [0, 0, 1, 1], [], []>} : vector<8x1024xbf16>, vector<1024x128xbf16>, vector<8x128xf32> -> vector<8x128xf32>
    %c0_3 = arith.constant 0 : index
    %c0_4 = arith.constant 0 : index
    %53 = vector.load %arg3[%c0_3, %c0_4] : memref<1x128xf32, #tpu.memory_space<vmem>>, vector<1x128xf32>
    %54 = vector.broadcast %53 : vector<1x128xf32> to vector<8x128xf32>
    %55 = arith.addf %52, %54 : vector<8x128xf32>
    %cst_5 = arith.constant 0.000000e+00 : f32
    %56 = vector.broadcast %cst_5 : f32 to vector<8x128xf32>
    %57 = arith.maximumf %55, %56 : vector<8x128xf32>
    %58 = arith.truncf %57 : vector<8x128xf32> to vector<8x128xbf16>
    %c0_6 = arith.constant 0 : index
    %c0_7 = arith.constant 0 : index
    %59 = vector.load %arg4[%c0_6, %c0_7] : memref<128x128xbf16, #tpu.memory_space<vmem>>, vector<128x128xbf16>
    %cst_8 = arith.constant dense<0.000000e+00> : vector<8x128xf32>
    %60 = tpu.matmul %58, %59, %cst_8 {dimension_numbers = #tpu.dot_dimension_numbers<[1], [0], [0], [1], [0, 0, 1, 1], [], []>} : vector<8x128xbf16>, vector<128x128xbf16>, vector<8x128xf32> -> vector<8x128xf32>
    %c0_9 = arith.constant 0 : index
    %c0_10 = arith.constant 0 : index
    %61 = vector.load %arg5[%c0_9, %c0_10] : memref<1x128xf32, #tpu.memory_space<vmem>>, vector<1x128xf32>
    %62 = vector.broadcast %61 : vector<1x128xf32> to vector<8x128xf32>
    %63 = arith.addf %60, %62 : vector<8x128xf32>
    %cst_11 = arith.constant 0.000000e+00 : f32
    %64 = vector.broadcast %cst_11 : f32 to vector<8x128xf32>
    %65 = arith.maximumf %63, %64 : vector<8x128xf32>
    %66 = arith.truncf %65 : vector<8x128xf32> to vector<8x128xbf16>
    %c0_12 = arith.constant 0 : index
    %c0_13 = arith.constant 0 : index
    %67 = vector.load %arg6[%c0_12, %c0_13] : memref<128x128xbf16, #tpu.memory_space<vmem>>, vector<128x128xbf16>
    %cst_14 = arith.constant dense<0.000000e+00> : vector<8x128xf32>
    %68 = tpu.matmul %66, %67, %cst_14 {dimension_numbers = #tpu.dot_dimension_numbers<[1], [0], [0], [1], [0, 0, 1, 1], [], []>} : vector<8x128xbf16>, vector<128x128xbf16>, vector<8x128xf32> -> vector<8x128xf32>
    %c0_15 = arith.constant 0 : index
    %c0_16 = arith.constant 0 : index
    %69 = vector.load %arg7[%c0_15, %c0_16] : memref<1x128xf32, #tpu.memory_space<vmem>>, vector<1x128xf32>
    %70 = vector.broadcast %69 : vector<1x128xf32> to vector<8x128xf32>
    %71 = arith.addf %68, %70 : vector<8x128xf32>
    %cst_17 = arith.constant 0.000000e+00 : f32
    %72 = vector.broadcast %cst_17 : f32 to vector<8x128xf32>
    %73 = arith.maximumf %71, %72 : vector<8x128xf32>
    %74 = arith.truncf %73 : vector<8x128xf32> to vector<8x128xbf16>
    %c0_18 = arith.constant 0 : index
    %c0_19 = arith.constant 0 : index
    %75 = vector.load %arg8[%c0_18, %c0_19] : memref<128x128xbf16, #tpu.memory_space<vmem>>, vector<128x128xbf16>
    %cst_20 = arith.constant dense<0.000000e+00> : vector<8x128xf32>
    %76 = tpu.matmul %74, %75, %cst_20 {dimension_numbers = #tpu.dot_dimension_numbers<[1], [0], [0], [1], [0, 0, 1, 1], [], []>} : vector<8x128xbf16>, vector<128x128xbf16>, vector<8x128xf32> -> vector<8x128xf32>
    %c0_21 = arith.constant 0 : index
    %c0_22 = arith.constant 0 : index
    %77 = vector.load %arg9[%c0_21, %c0_22] : memref<1x128xf32, #tpu.memory_space<vmem>>, vector<1x128xf32>
    %78 = vector.broadcast %77 : vector<1x128xf32> to vector<8x128xf32>
    %79 = arith.addf %76, %78 : vector<8x128xf32>
    %c0_23 = arith.constant 0 : index
    %c0_24 = arith.constant 0 : index
    %80 = vector.load %arg10[%c0_23, %c0_24] : memref<8x128xf32, #tpu.memory_space<vmem>>, vector<8x128xf32>
    tpu.vector_store %arg10[%c0_23, %c0_24], %79 {strides = array<i32>} : memref<8x128xf32, #tpu.memory_space<vmem>>, vector<8x128xf32>,
    return
  }
  func.func @transform_0(%arg0: i32) -> (i32, i32) {
    %c0_i32 = arith.constant 0 : i32
    %c0_i32_0 = arith.constant 0 : i32
    return %arg0, %c0_i32 : i32, i32
  }
  func.func @transform_1(%arg0: i32) -> (i32, i32) {
    %c0_i32 = arith.constant 0 : i32
    %c0_i32_0 = arith.constant 0 : i32
    %c0_i32_1 = arith.constant 0 : i32
    return %c0_i32, %c0_i32_0 : i32, i32
  }
  func.func @transform_2(%arg0: i32) -> (i32, i32) {
    %c0_i32 = arith.constant 0 : i32
    %c0_i32_0 = arith.constant 0 : i32
    %c0_i32_1 = arith.constant 0 : i32
    return %c0_i32, %c0_i32_0 : i32, i32
  }
  func.func @transform_3(%arg0: i32) -> (i32, i32) {
    %c0_i32 = arith.constant 0 : i32
    %c0_i32_0 = arith.constant 0 : i32
    %c0_i32_1 = arith.constant 0 : i32
    return %c0_i32, %c0_i32_0 : i32, i32
  }
  func.func @transform_4(%arg0: i32) -> (i32, i32) {
    %c0_i32 = arith.constant 0 : i32
    %c0_i32_0 = arith.constant 0 : i32
    %c0_i32_1 = arith.constant 0 : i32
    return %c0_i32, %c0_i32_0 : i32, i32
  }
  func.func @transform_5(%arg0: i32) -> (i32, i32) {
    %c0_i32 = arith.constant 0 : i32
    %c0_i32_0 = arith.constant 0 : i32
    %c0_i32_1 = arith.constant 0 : i32
    return %c0_i32, %c0_i32_0 : i32, i32
  }
  func.func @transform_6(%arg0: i32) -> (i32, i32) {
    %c0_i32 = arith.constant 0 : i32
    %c0_i32_0 = arith.constant 0 : i32
    %c0_i32_1 = arith.constant 0 : i32
    return %c0_i32, %c0_i32_0 : i32, i32
  }
  func.func @transform_7(%arg0: i32) -> (i32, i32) {
    %c0_i32 = arith.constant 0 : i32
    %c0_i32_0 = arith.constant 0 : i32
    %c0_i32_1 = arith.constant 0 : i32
    return %c0_i32, %c0_i32_0 : i32, i32
  }
  func.func @transform_8(%arg0: i32) -> (i32, i32) {
    %c0_i32 = arith.constant 0 : i32
    %c0_i32_0 = arith.constant 0 : i32
    %c0_i32_1 = arith.constant 0 : i32
    return %c0_i32, %c0_i32_0 : i32, i32
  }
  func.func @transform_9(%arg0: i32) -> (i32, i32) {
    %c0_i32 = arith.constant 0 : i32
    %c0_i32_0 = arith.constant 0 : i32
    return %arg0, %c0_i32 : i32, i32
  }
}

</mosaic_0001>

<bundles_post_ra>
// kernel: tpu_custom_call.1
= control target key start
LH: loop header
LB: loop body
LE: loop exit
PB: predicated region body
PF: predicated region fallthrough
CT: control target
= control target key end

     0   :  { %14 = vsyncpa [#allocation3], 0  ;;  %s1955_s0 = inlined_call_operand.hbm [shape: s32[8,8], index: 0, kind: input, shape index: {}]   ;;  %s1956_s1 = inlined_call_operand.hbm [shape: bf16[1024,128], index: 1, kind: input, shape index: {}]   ;;  %s1957_s2 = inlined_call_operand.vmem [shape: f32[1,128], index: 2, kind: input, shape index: {}]   ;;  %s1958_s3 = inlined_call_operand.hbm [shape: bf16[128,128], index: 3, kind: input, shape index: {}]   ;;  %s1959_s4 = inlined_call_operand.vmem [shape: f32[1,128], index: 4, kind: input, shape index: {}]   ;;  %s1960_s5 = inlined_call_operand.hbm [shape: bf16[128,128], index: 5, kind: input, shape index: {}]   ;;  %s1961_s6 = inlined_call_operand.vmem [shape: f32[1,128], index: 6, kind: input, shape index: {}]   ;;  %s1962_s7 = inlined_call_operand.hbm [shape: bf16[128,128], index: 7, kind: input, shape index: {}]   ;;  %s1963_s8 = inlined_call_operand.vmem [shape: f32[1,128], index: 8, kind: input, shape index: {}]   ;;  %s1964_s9 = inlined_call_operand.hbm [shape: f32[8,128], index: 9, kind: output, shape index: {}]  }
   0x1   :  { %15 = vsyncpa [#allocation6], 0 }
   0x2   :  { %16 = vsyncpa [#allocation9], 0 }
   0x3   :  { %17 = vsyncpa [#allocation4], 0  ;;  %s1742_s30 = smov [#allocation5]   ;;  %s1602_s13 = scalar_lea.hbm %s1956_s1, 8192 }
   0x4   :  { %s33_s10 = sshll.u32 %s1742_s30, 4  ;;  %p1603_p0 = scmp.ne.s32.totalorder %s1956_s1, %s1602_s13  ;;  %s34_s10 = int_to_ptr.vmem [resolvable:$true] %s33_s10 }
   0x5   :  { %p1606_p1 = scmp.lt.u32.totalorder %s1602_s13, %s1956_s1 }
   0x7   :  { %p1608_p2 = pnand %p1606_p1, %p1603_p0 }
   0x9   :  { %1611 = shalt.err (!%p1608_p2)
}
   0xa   :  { %s1612_s18 = scalar_lea.vmem %s34_s10, 8192  ;;  %p1617_p4 = scmp.lt.s32.totalorder %s34_s10, %s34_s10 }
   0xb   :  { %p1613_p3 = scmp.ne.s32.totalorder %s34_s10, %s1612_s18  ;;  %p1618_p5 = scmp.lt.s32.totalorder %s1612_s18, %s1612_s18 }
   0xd   :  { %p1619_p6 = por %p1618_p5, %p1617_p4 }
   0xf   :  { %p1620_p7 = pnand %p1619_p6, %p1613_p3 }
  0x11   :  { %1623 = shalt.err (!%p1620_p7)
}
  0x12   :  { %s1743_s19 = smov 64   ;;  %s1744_s20 = smov 4  }
  0x13   :  { %39 = dma.hbm_to_vmem [thread:$0]  %s1956_s1, 8192, %s34_s10, [#allocation6], %s1743_s19, %s1743_s19, %s1744_s20  }
  0x14   :  { %s1745_s23 = smov [#allocation8]   ;;  %s1746_s25 = smov [#allocation2]  }
  0x15   :  { %s61_s24 = sshll.u32 %s1745_s23, 4  ;;  %s24_s26 = sshll.u32 %s1746_s25, 4  ;;  %s62_s24 = int_to_ptr.vmem [resolvable:$true] %s61_s24  ;;  %s25_s26 = int_to_ptr.vmem [resolvable:$true] %s24_s26 }
  0x16   :  { %s1624_s29 = scalar_lea.hbm %s1960_s5, 1024 }
  0x17   :  { %p1625_p8 = scmp.ne.s32.totalorder %s1960_s5, %s1624_s29  ;;  %p1628_p9 = scmp.lt.u32.totalorder %s1624_s29, %s1960_s5 }
  0x19   :  { %p1630_p10 = pnand %p1628_p9, %p1625_p8 }
  0x1b   :  { %1633 = shalt.err (!%p1630_p10)
}
  0x1c   :  { %s1634_s1 = scalar_lea.vmem %s62_s24, 1024  ;;  %p1639_p12 = scmp.lt.s32.totalorder %s62_s24, %s62_s24 }
  0x1d   :  { %p1635_p11 = scmp.ne.s32.totalorder %s62_s24, %s1634_s1  ;;  %p1640_p13 = scmp.lt.s32.totalorder %s1634_s1, %s1634_s1 }
  0x1f   :  { %p1641_p0 = por %p1640_p13, %p1639_p12 }
  0x21   :  { %p1642_p1 = pnand %p1641_p0, %p1635_p11 }
  0x23   :  { %1645 = shalt.err (!%p1642_p1)
}
  0x24   :  { %67 = dma.hbm_to_vmem [thread:$0]  %s1960_s5, 1024, %s62_s24, [#allocation9], %s1743_s19, %s1743_s19, %s1744_s20  }
  0x25   :  { %s1646_s17 = scalar_lea.hbm %s1955_s0, 128 }
  0x26   :  { %p1647_p2 = scmp.ne.s32.totalorder %s1955_s0, %s1646_s17  ;;  %p1650_p3 = scmp.lt.u32.totalorder %s1646_s17, %s1955_s0 }
  0x28   :  { %p1652_p4 = pnand %p1650_p3, %p1647_p2 }
  0x2a   :  { %1655 = shalt.err (!%p1652_p4)
}
  0x2b   :  { %s1656_s25 = scalar_lea.vmem %s25_s26, 128  ;;  %p1661_p6 = scmp.lt.s32.totalorder %s25_s26, %s25_s26 }
  0x2c   :  { %p1657_p5 = scmp.ne.s32.totalorder %s25_s26, %s1656_s25  ;;  %p1662_p7 = scmp.lt.s32.totalorder %s1656_s25, %s1656_s25 }
  0x2e   :  { %p1663_p8 = por %p1662_p7, %p1661_p6 }
  0x30   :  { %p1664_p9 = pnand %p1663_p8, %p1657_p5 }
  0x32   :  { %1667 = shalt.err (!%p1664_p9)
}
  0x33   :  { %27 = dma.hbm_to_vmem [thread:$0]  %s1955_s0, 128, %s25_s26, [#allocation3]  }
  0x34   :  { %s1747_s27 = smov [#allocation7]   ;;  %s1748_s29 = smov [#allocation10]  }
  0x35   :  { %s47_s28 = sshll.u32 %s1747_s27, 4  ;;  %s75_s30 = sshll.u32 %s1748_s29, 4  ;;  %s48_s28 = int_to_ptr.vmem [resolvable:$true] %s47_s28  ;;  %s76_s30 = int_to_ptr.vmem [resolvable:$true] %s75_s30 }
  0x36   :  { %s1668_s13 = scalar_lea.hbm %s1958_s3, 1024 }
  0x37   :  { %p1669_p10 = scmp.ne.s32.totalorder %s1958_s3, %s1668_s13  ;;  %p1672_p11 = scmp.lt.u32.totalorder %s1668_s13, %s1958_s3 }
  0x39   :  { %p1674_p12 = pnand %p1672_p11, %p1669_p10 }
  0x3b   :  { %1677 = shalt.err (!%p1674_p12)
}
  0x3c   :  { %s1678_s0 = scalar_lea.vmem %s48_s28, 1024  ;;  %p1683_p0 = scmp.lt.s32.totalorder %s48_s28, %s48_s28 }
  0x3d   :  { %p1679_p13 = scmp.ne.s32.totalorder %s48_s28, %s1678_s0  ;;  %p1684_p1 = scmp.lt.s32.totalorder %s1678_s0, %s1678_s0 }
  0x3f   :  { %p1685_p2 = por %p1684_p1, %p1683_p0 }
  0x41   :  { %p1686_p3 = pnand %p1685_p2, %p1679_p13 }
  0x43   :  { %1689 = shalt.err (!%p1686_p3)
}
  0x44   :  { %53 = dma.hbm_to_vmem [thread:$0]  %s1958_s3, 1024, %s48_s28, [#allocation6], %s1743_s19, %s1743_s19, %s1744_s20  }
  0x45   :  { %s1690_s21 = scalar_lea.hbm %s1962_s7, 1024 }
  0x46   :  { %p1691_p4 = scmp.ne.s32.totalorder %s1962_s7, %s1690_s21  ;;  %p1694_p5 = scmp.lt.u32.totalorder %s1690_s21, %s1962_s7 }
  0x48   :  { %p1696_p6 = pnand %p1694_p5, %p1691_p4 }
  0x4a   :  { %1699 = shalt.err (!%p1696_p6)
}
  0x4b   :  { %s1700_s24 = scalar_lea.vmem %s76_s30, 1024  ;;  %p1705_p8 = scmp.lt.s32.totalorder %s76_s30, %s76_s30 }
  0x4c   :  { %p1701_p7 = scmp.ne.s32.totalorder %s76_s30, %s1700_s24  ;;  %p1706_p9 = scmp.lt.s32.totalorder %s1700_s24, %s1700_s24 }
  0x4e   :  { %p1707_p10 = por %p1706_p9, %p1705_p8 }
  0x50   :  { %p1708_p11 = pnand %p1707_p10, %p1701_p7 }
  0x52   :  { %1711 = shalt.err (!%p1708_p11)
}
  0x53   :  { %81 = dma.hbm_to_vmem [thread:$0]  %s1962_s7, 1024, %s76_s30, [#allocation9], %s1743_s19, %s1743_s19, %s1744_s20  }
  0x54   :  { %1734 = dma.done.wait [#allocation3], 128  }
  0x55   :  { %1735 = vsyncadd [#allocation3], 4294967168 }
  0x56   :  { %1736 = dma.done.wait [#allocation6], 9216  }
  0x57   :  { %1737 = vsyncadd [#allocation6], 4294958080 }
  0x58   :  { %1738 = dma.done.wait [#allocation9], 2048  }
  0x59   :  { %1739 = vsyncadd [#allocation9], 4294965248  ;;  %v1749_v0 = vmov 3   ;;  %v1750_v1 = vmov 1   ;;  %v100_v2 = vld [vmem:[#allocation2] sm:$0xff]  ;;  %v1514_v3 = vld [vmem:[#allocation5 + $0x40] sm:$0xff]   ;;  %v101_v43 = vlaneseq }
  0x5a   :  { %1507 = vset.pattern.permute.xlu1 %v1749_v0  ;;  %1505 = vset.pattern.permute.xlu0 %v1750_v1  ;;  %v1515_v4 = vld [vmem:[#allocation5 + $0xc0] sm:$0xff]   ;;  %v1751_v7 = vmov 2   ;;  %v1752_v8 = vmov 0   ;;  %v1518_v9 = vld [vmem:[#allocation5 + $0x48] sm:$0xff]   ;;  %v1522_v13 = vld [vmem:[#allocation5 + $0x50] sm:$0xff]   ;;  %v1753_v14 = vmov 5  }
  0x5b   :  { %125 = vperm.xlu1 %1507, %v100_v2   ;;  %111 = vperm.xlu0 %1505, %v100_v2   ;;  %v1516_v5 = vld [vmem:[#allocation5] sm:$0xff]   ;;  %v1519_v10 = vld [vmem:[#allocation5 + $0xc8] sm:$0xff]   ;;  %v1754_v15 = vmov 4   ;;  %v1523_v16 = vld [vmem:[#allocation5 + $0xd0] sm:$0xff]   ;;  %v1755_v21 = vmov 7   ;;  %v1756_v27 = vmov 6  }
  0x5c   :  { %1311 = vmatprep.subr.bf16.mxu0 %v1514_v3  ;;  %1333 = vmatprep.subr.bf16.mxu1 %v1515_v4  ;;  %v1517_v6 = vld [vmem:[#allocation5 + $0x80] sm:$0xff]   ;;  %v1520_v11 = vld [vmem:[#allocation5 + $0x8] sm:$0xff]   ;;  %v1524_v17 = vld [vmem:[#allocation5 + $0x10] sm:$0xff]   ;;  %v1883_v44 = vand.u32 127, %v101_v43  ;;  %v1757_v47 = vmov 1.0|1.0  }
  0x5d   :  { %1312 = vmatpush3.bf16.msra.mxu0 %v1516_v5  ;;  %1334 = vmatpush3.bf16.msra.mxu1 %v1517_v6  ;;  %v1521_v12 = vld [vmem:[#allocation5 + $0x88] sm:$0xff]   ;;  %v1525_v18 = vld [vmem:[#allocation5 + $0x90] sm:$0xff]   ;;  %v1526_v19 = vld [vmem:[#allocation5 + $0x58] sm:$0xff]   ;;  %s1760_s11 = smov [#allocation11]  }
  0x5e   :  { %1313 = vmatprep.subr.bf16.mxu0 %v1518_v9  ;;  %1335 = vmatprep.subr.bf16.mxu1 %v1519_v10  ;;  %v1527_v20 = vld [vmem:[#allocation5 + $0xd8] sm:$0xff]   ;;  %v1530_v24 = vld [vmem:[#allocation5 + $0x60] sm:$0xff]   ;;  %v1534_v29 = vld [vmem:[#allocation5 + $0x68] sm:$0xff]   ;;  %s1184_s12 = sshll.u32 %s1760_s11, 4  ;;  %s1185_s12 = int_to_ptr.vmem [resolvable:$true] %s1184_s12 }
  0x5f   :  { %1508 = vset.pattern.permute.xlu1 %v1751_v7  ;;  %1506 = vset.pattern.permute.xlu0 %v1752_v8  ;;  %v1528_v22 = vld [vmem:[#allocation5 + $0x18] sm:$0xff]   ;;  %v1531_v25 = vld [vmem:[#allocation5 + $0xe0] sm:$0xff]   ;;  %v1535_v30 = vld [vmem:[#allocation5 + $0xe8] sm:$0xff]   ;;  %p1717_p13 = scmp.lt.s32.totalorder %s1185_s12, %s1185_s12 }
  0x60   :  { %118 = vperm.xlu1 %1508, %v100_v2   ;;  %104 = vperm.xlu0 %1506, %v100_v2   ;;  %v1529_v23 = vld [vmem:[#allocation5 + $0x98] sm:$0xff]   ;;  %v1532_v26 = vld [vmem:[#allocation5 + $0x20] sm:$0xff]   ;;  %v1536_v31 = vld [vmem:[#allocation5 + $0x28] sm:$0xff]  }
  0x61   :  { %1314 = vmatpush3.bf16.msra.mxu0 %v1520_v11  ;;  %1336 = vmatpush3.bf16.msra.mxu1 %v1521_v12  ;;  %v1533_v28 = vld [vmem:[#allocation5 + $0xa0] sm:$0xff]   ;;  %v1537_v32 = vld [vmem:[#allocation5 + $0xa8] sm:$0xff]   ;;  %v1538_v33 = vld [vmem:[#allocation5 + $0x70] sm:$0xff]  }
  0x62   :  { %1315 = vmatprep.subr.bf16.mxu0 %v1522_v13  ;;  %1337 = vmatprep.subr.bf16.mxu1 %v1523_v16  ;;  %v1539_v34 = vld [vmem:[#allocation5 + $0xf0] sm:$0xff]   ;;  %v1542_v37 = vld [vmem:[#allocation5 + $0x78] sm:$0xff]   ;;  %v1546_v41 = vld [vmem:[#allocation5 + $0x140] sm:$0xff]  }
  0x63   :  { %v1540_v35 = vld [vmem:[#allocation5 + $0x30] sm:$0xff]   ;;  %v1543_v38 = vld [vmem:[#allocation5 + $0xf8] sm:$0xff]   ;;  %v1547_v42 = vld [vmem:[#allocation5 + $0x1c0] sm:$0xff]  }
  0x64   :  { %1509 = vset.pattern.permute.xlu1 %v1753_v14  ;;  %1510 = vset.pattern.permute.xlu0 %v1754_v15  ;;  %v1541_v36 = vld [vmem:[#allocation5 + $0xb0] sm:$0xff]   ;;  %v1544_v39 = vld [vmem:[#allocation5 + $0x38] sm:$0xff]   ;;  %v1549_v50 = vld [vmem:[#allocation5 + $0x180] sm:$0xff]  }
  0x65   :  { %139 = vperm.xlu1 %1509, %v100_v2   ;;  %132 = vperm.xlu0 %1510, %v100_v2   ;;  %v1545_v40 = vld [vmem:[#allocation5 + $0xb8] sm:$0xff]   ;;  %v1548_v51 = vld [vmem:[#allocation5 + $0x100] sm:$0xff]   ;;  %v1551_v52 = vld [vmem:[#allocation5 + $0x1c8] sm:$0xff]  }
  0x66   :  { %1316 = vmatpush3.bf16.msra.mxu0 %v1524_v17  ;;  %1338 = vmatpush3.bf16.msra.mxu1 %v1525_v18  ;;  %v1550_v53 = vld [vmem:[#allocation5 + $0x148] sm:$0xff]   ;;  %v1555_v56 = vld [vmem:[#allocation5 + $0x1d0] sm:$0xff]   ;;  %v1559_v61 = vld [vmem:[#allocation5 + $0x1d8] sm:$0xff]  }
  0x67   :  { %1317 = vmatprep.subr.bf16.mxu0 %v1526_v19  ;;  %1339 = vmatprep.subr.bf16.mxu1 %v1527_v20  ;;  %v1553_v54 = vld [vmem:[#allocation5 + $0x188] sm:$0xff]   ;;  %v1554_v58 = vld [vmem:[#allocation5 + $0x150] sm:$0xff]   ;;  %v1558_v62 = vld [vmem:[#allocation5 + $0x158] sm:$0xff]  }
  0x68   :  { %v1552_v55 = vld [vmem:[#allocation5 + $0x108] sm:$0xff]   ;;  %v1557_v59 = vld [vmem:[#allocation5 + $0x190] sm:$0xff]   ;;  %v1561_v0 = vld [vmem:[#allocation5 + $0x198] sm:$0xff]  }
  0x69   :  { %1511 = vset.pattern.permute.xlu1 %v1755_v21  ;;  %1513 = vset.pattern.permute.xlu0 %v1755_v21  ;;  %v1556_v60 = vld [vmem:[#allocation5 + $0x110] sm:$0xff]   ;;  %v1560_v1 = vld [vmem:[#allocation5 + $0x118] sm:$0xff]   ;;  %v1562_v3 = vld [vmem:[#allocation5 + $0x160] sm:$0xff]   ;;  %v1758_v21 = vmov 0.0  }
  0x6a   :  { %153 = vperm.xlu1 %1511, %v100_v2   ;;  %1318 = vmatpush3.bf16.msra.mxu0 %v1528_v22  ;;  %v1565_v4 = vld [vmem:[#allocation5 + $0x1a0] sm:$0xff]   ;;  %v1567_v6 = vld [vmem:[#allocation5 + $0x1e8] sm:$0xff]   ;;  %v1571_v10 = vld [vmem:[#allocation5 + $0x1f0] sm:$0xff]  }
  0x6b   :  { %1340 = vmatpush3.bf16.msra.mxu1 %v1529_v23  ;;  %1319 = vmatprep.subr.bf16.mxu0 %v1530_v24  ;;  %v1564_v5 = vld [vmem:[#allocation5 + $0x120] sm:$0xff]   ;;  %v1566_v7 = vld [vmem:[#allocation5 + $0x168] sm:$0xff]   ;;  %v1570_v11 = vld [vmem:[#allocation5 + $0x170] sm:$0xff]  }
  0x6c   :  { %1341 = vmatprep.subr.bf16.mxu1 %v1531_v25  ;;  %v1568_v8 = vld [vmem:[#allocation5 + $0x1a8] sm:$0xff]   ;;  %v1572_v12 = vld [vmem:[#allocation5 + $0x1b0] sm:$0xff]   ;;  %v1575_v14 = vld [vmem:[#allocation5 + $0x1f8] sm:$0xff]  }
  0x6d   :  { %v1569_v9 = vld [vmem:[#allocation5 + $0x128] sm:$0xff]   ;;  %v1573_v13 = vld [vmem:[#allocation5 + $0x130] sm:$0xff]   ;;  %v1574_v15 = vld [vmem:[#allocation5 + $0x178] sm:$0xff]  }
  0x6e   :  { %1512 = vset.pattern.permute.xlu1 %v1756_v27  ;;  %1320 = vmatpush3.bf16.msra.mxu0 %v1532_v26  ;;  %v1576_v18 = vld [vmem:[#allocation5 + $0x1b8] sm:$0xff]   ;;  %v1578_v20 = vld [vmem:[#allocation7] sm:$0xff]   ;;  %v1579_v22 = vld [vmem:[#allocation7 + $0x8] sm:$0xff]  }
  0x6f   :  { %146 = vperm.xlu1 %1512, %v100_v2   ;;  %1342 = vmatpush3.bf16.msra.mxu1 %v1533_v28  ;;  %v1563_v2 = vld [vmem:[#allocation5 + $0x1e0] sm:$0xff]   ;;  %v1577_v19 = vld [vmem:[#allocation5 + $0x138] sm:$0xff]   ;;  %v1580_v23 = vld [vmem:[#allocation7 + $0x10] sm:$0xff]  }
  0x70   :  { %1321 = vmatprep.subr.bf16.mxu0 %v1534_v29  ;;  %1343 = vmatprep.subr.bf16.mxu1 %v1535_v30  ;;  %v1581_v24 = vld [vmem:[#allocation7 + $0x18] sm:$0xff]   ;;  %v1582_v25 = vld [vmem:[#allocation7 + $0x20] sm:$0xff]   ;;  %v1583_v26 = vld [vmem:[#allocation7 + $0x28] sm:$0xff]  }
  0x71   :  { %v1584_v27 = vld [vmem:[#allocation7 + $0x30] sm:$0xff]   ;;  %v1585_v28 = vld [vmem:[#allocation7 + $0x38] sm:$0xff]   ;;  %v1586_v29 = vld [vmem:[#allocation8] sm:$0xff]  }
  0x72   :  { %1322 = vmatpush3.bf16.msra.mxu0 %v1536_v31  ;;  %v1587_v30 = vld [vmem:[#allocation8 + $0x8] sm:$0xff]   ;;  %v1588_v31 = vld [vmem:[#allocation8 + $0x10] sm:$0xff]  }
  0x73   :  { %1344 = vmatpush3.bf16.msra.mxu1 %v1537_v32  ;;  %1323 = vmatprep.subr.bf16.mxu0 %v1538_v33  ;;  %v1589_v32 = vld [vmem:[#allocation8 + $0x18] sm:$0xff]   ;;  %v1590_v33 = vld [vmem:[#allocation8 + $0x20] sm:$0xff]  }
  0x74   :  { %1345 = vmatprep.subr.bf16.mxu1 %v1539_v34  ;;  %v1591_v34 = vld [vmem:[#allocation8 + $0x28] sm:$0xff]  }
  0x76   :  { %1324 = vmatpush3.bf16.msra.mxu0 %v1540_v35 }
  0x77   :  { %1346 = vmatpush3.bf16.msra.mxu1 %v1541_v36  ;;  %1325 = vmatprep.subr.bf16.mxu0 %v1542_v37 }
  0x78   :  { %1347 = vmatprep.subr.bf16.mxu1 %v1543_v38  ;;  %v1203_v38 = vld [vmem:[%s1957_s2] ss:$0 sm:$0xff] }
  0x7a   :  { %1326 = vmatpush3.bf16.msra.mxu0 %v1544_v39 }
  0x7b   :  { %1348 = vmatpush3.bf16.msra.mxu1 %v1545_v40  ;;  %1355 = vmatprep.subr.bf16.mxu0 %v1546_v41 }
  0x7c   :  { %1377 = vmatprep.subr.bf16.mxu1 %v1547_v42 }
  0xda   :  { %v112_v45 = vpop.permute.xlu0 %111  ;;  %v126_v46 = vpop.permute.xlu1 %125 }
  0xdb   :  { %vm113_vm0 = vcmp.eq.s32.totalorder %v112_v45, %v1883_v44  ;;  %vm127_vm1 = vcmp.eq.s32.totalorder %v126_v46, %v1883_v44 }
  0xdc   :  { %vm1268_vm2 = vmpackc.low %vm113_vm0, %vm113_vm0  ;;  %vm1759_vm0 = vmmov 0  }
  0xdd   :  { %1269 = vmatprep.mubr.msk.bf16.mxu0 %vm1268_vm2, %v1757_v47  ;;  %vm1272_vm3 = vmpackc.low %vm127_vm1, %vm127_vm1 }
  0xde   :  { %1273 = vmatprep.mubr.msk.bf16.mxu1 %vm1272_vm3, %v1757_v47 }
  0xdf   :  { %v119_v48 = vpop.permute.xlu1 %118  ;;  %v105_v49 = vpop.permute.xlu0 %104 }
  0xe0   :  { %vm120_vm4 = vcmp.eq.s32.totalorder %v119_v48, %v1883_v44  ;;  %vm106_vm5 = vcmp.eq.s32.totalorder %v105_v49, %v1883_v44 }
  0xe1   :  { %vm1274_vm6 = vmpackc.low %vm120_vm4, %vm120_vm4 }
  0xe2   :  { %vm1270_vm7 = vmpackc.low %vm106_vm5, %vm106_vm5  ;;  %1275 = vmatmul.mubr.msk.bf16.vlgmr.msra.gmra.mrb[0].mxu1 %vm1274_vm6, %v1757_v47 }
  0xe3   :  { %1271 = vmatmul.mubr.msk.bf16.vlgmr.msra.gmra.mrb[0].mxu0 %vm1270_vm7, %v1757_v47  ;;  %1378 = vmatpush3.bf16.msra.mxu1 %v1549_v50 }
  0xe4   :  { %1356 = vmatpush3.bf16.msra.mxu0 %v1548_v51  ;;  %1379 = vmatprep.subr.bf16.mxu1 %v1551_v52  ;;  %v140_v57 = vpop.permute.xlu1 %139  ;;  %v133_v17 = vpop.permute.xlu0 %132 }
  0xe5   :  { %1357 = vmatprep.subr.bf16.mxu0 %v1550_v53  ;;  %vm141_vm8 = vcmp.eq.s32.totalorder %v140_v57, %v1883_v44  ;;  %vm134_vm13 = vcmp.eq.s32.totalorder %v133_v17, %v1883_v44 }
  0xe6   :  { %vm1276_vm9 = vmpackc.low %vm141_vm8, %vm141_vm8 }
  0xe7   :  { %1380 = vmatpush3.bf16.msra.mxu1 %v1553_v54  ;;  %1277 = vmatprep.mubr.msk.bf16.mxu0 %vm1276_vm9, %v1757_v47  ;;  %vm1278_vm15 = vmpackc.low %vm134_vm13, %vm134_vm13 }
  0xe8   :  { %1358 = vmatpush3.bf16.msra.mxu0 %v1552_v55  ;;  %1381 = vmatprep.subr.bf16.mxu1 %v1555_v56 }
  0xe9   :  { %1359 = vmatprep.subr.bf16.mxu0 %v1554_v58  ;;  %v154_v63 = vpop.permute.xlu1 %153 }
  0xea   :  { %vm155_vm10 = vcmp.eq.s32.totalorder %v154_v63, %v1883_v44  ;;  %v1593_v63 = vld [vmem:[#allocation8 + $0x38] sm:$0xff]  }
  0xeb   :  { %1382 = vmatpush3.bf16.msra.mxu1 %v1557_v59  ;;  %vm1280_vm11 = vmpackc.low %vm155_vm10, %vm155_vm10 }
  0xec   :  { %1360 = vmatpush3.bf16.msra.mxu0 %v1556_v60  ;;  %1383 = vmatprep.subr.bf16.mxu1 %v1559_v61 }
  0xed   :  { %1361 = vmatprep.subr.bf16.mxu0 %v1558_v62  ;;  %1281 = vmatprep.mubr.msk.bf16.mxu1 %vm1280_vm11, %v1757_v47  ;;  %v1592_v62 = vld [vmem:[#allocation8 + $0x30] sm:$0xff]  }
  0xee   :  { %v147_v16 = vpop.permute.xlu1 %146 }
  0xef   :  { %1384 = vmatpush3.bf16.msra.mxu1 %v1561_v0  ;;  %vm148_vm12 = vcmp.eq.s32.totalorder %v147_v16, %v1883_v44  ;;  %v1594_v0 = vld [vmem:[#allocation10] sm:$0xff]   ;;  %v1293_v16 = vld [vmem:[%s1961_s6] ss:$0 sm:$0xff]  ;;  %s1712_s6 = scalar_lea.vmem %s1185_s12, 128 }
  0xf0   :  { %1362 = vmatpush3.bf16.msra.mxu0 %v1560_v1  ;;  %1385 = vmatprep.subr.bf16.mxu1 %v1563_v2  ;;  %vm1282_vm14 = vmpackc.low %vm148_vm12, %vm148_vm12  ;;  %v1595_v1 = vld [vmem:[#allocation10 + $0x8] sm:$0xff]   ;;  %v1596_v2 = vld [vmem:[#allocation10 + $0x10] sm:$0xff]   ;;  %p1713_p12 = scmp.ne.s32.totalorder %s1185_s12, %s1712_s6  ;;  %p1718_p0 = scmp.lt.s32.totalorder %s1712_s6, %s1712_s6 }
  0xf1   :  { %1363 = vmatprep.subr.bf16.mxu0 %v1562_v3  ;;  %v1597_v3 = vld [vmem:[#allocation10 + $0x18] sm:$0xff]  }
  0xf2   :  { %p1719_p1 = por %p1718_p0, %p1717_p13 }
  0xf3   :  { %1386 = vmatpush3.bf16.msra.mxu1 %v1565_v4  ;;  %v1598_v4 = vld [vmem:[#allocation10 + $0x20] sm:$0xff]  }
  0xf4   :  { %1364 = vmatpush3.bf16.msra.mxu0 %v1564_v5  ;;  %1387 = vmatprep.subr.bf16.mxu1 %v1567_v6  ;;  %v1599_v5 = vld [vmem:[#allocation10 + $0x28] sm:$0xff]   ;;  %v1284_v6 = vld [vmem:[%s1959_s4] ss:$0 sm:$0xff]  ;;  %p1720_p2 = pnand %p1719_p1, %p1713_p12 }
  0xf5   :  { %1365 = vmatprep.subr.bf16.mxu0 %v1566_v7 }
  0xf7   :  { %1388 = vmatpush3.bf16.msra.mxu1 %v1568_v8 }
  0xf8   :  { %1366 = vmatpush3.bf16.msra.mxu0 %v1569_v9  ;;  %1389 = vmatprep.subr.bf16.mxu1 %v1571_v10 }
  0xf9   :  { %1367 = vmatprep.subr.bf16.mxu0 %v1570_v11 }
  0xfb   :  { %1390 = vmatpush3.bf16.msra.mxu1 %v1572_v12 }
  0xfc   :  { %1368 = vmatpush3.bf16.msra.mxu0 %v1573_v13  ;;  %1391 = vmatprep.subr.bf16.mxu1 %v1575_v14  ;;  %v1600_v14 = vld [vmem:[#allocation10 + $0x30] sm:$0xff]  }
  0xfd   :  { %1369 = vmatprep.subr.bf16.mxu0 %v1574_v15  ;;  %v1601_v15 = vld [vmem:[#allocation10 + $0x38] sm:$0xff]  }
  0xff   :  { %1392 = vmatpush3.bf16.msra.mxu1 %v1576_v18 }
 0x100   :  { %1370 = vmatpush3.bf16.msra.mxu0 %v1577_v19  ;;  %1446 = vmatprep.subr.bf16.mxu1 %v1758_v21 }
 0x101   :  { %1426 = vmatprep.subr.bf16.mxu0 %v1758_v21 }
 0x102   :  { %1283 = vmatmul.mubr.msk.bf16.vlgmr.msra.gmra.mrb[4].mxu1 %vm1282_vm14, %v1757_v47 }
 0x103   :  { %1279 = vmatmul.mubr.msk.bf16.vlgmr.msra.gmra.mrb[4].mxu0 %vm1278_vm15, %v1757_v47  ;;  %1462 = vmatprep.mubr.msk.bf16.mxu1 %vm1759_vm0, %v1758_v21 }
 0x104   :  { %1427 = vmatpush3.bf16.msra.mxu0 %v1578_v20  ;;  %1442 = vmatprep.mubr.msk.bf16.mxu0 %vm1759_vm0, %v1758_v21 }
 0x105   :  { %1428 = vmatprep.subr.bf16.mxu0 %v1758_v21  ;;  %1447 = vmatpush3.bf16.msra.mxu1 %v1586_v29 }
 0x106   :  { %1448 = vmatprep.subr.bf16.mxu1 %v1758_v21 }
 0x108   :  { %1429 = vmatpush3.bf16.msra.mxu0 %v1579_v22 }
 0x109   :  { %1430 = vmatprep.subr.bf16.mxu0 %v1758_v21  ;;  %1449 = vmatpush3.bf16.msra.mxu1 %v1587_v30 }
 0x10a   :  { %1450 = vmatprep.subr.bf16.mxu1 %v1758_v21 }
 0x10c   :  { %1431 = vmatpush3.bf16.msra.mxu0 %v1580_v23 }
 0x10d   :  { %1432 = vmatprep.subr.bf16.mxu0 %v1758_v21  ;;  %1451 = vmatpush3.bf16.msra.mxu1 %v1588_v31 }
 0x10e   :  { %1452 = vmatprep.subr.bf16.mxu1 %v1758_v21 }
 0x110   :  { %1433 = vmatpush3.bf16.msra.mxu0 %v1581_v24 }
 0x111   :  { %1434 = vmatprep.subr.bf16.mxu0 %v1758_v21  ;;  %1453 = vmatpush3.bf16.msra.mxu1 %v1589_v32 }
 0x112   :  { %1454 = vmatprep.subr.bf16.mxu1 %v1758_v21 }
 0x114   :  { %1435 = vmatpush3.bf16.msra.mxu0 %v1582_v25  ;;  %v1302_v25 = vld [vmem:[%s1963_s8] ss:$0 sm:$0xff] }
 0x115   :  { %1436 = vmatprep.subr.bf16.mxu0 %v1758_v21  ;;  %1455 = vmatpush3.bf16.msra.mxu1 %v1590_v33 }
 0x116   :  { %1456 = vmatprep.subr.bf16.mxu1 %v1758_v21 }
 0x118   :  { %1437 = vmatpush3.bf16.msra.mxu0 %v1583_v26 }
 0x119   :  { %1438 = vmatprep.subr.bf16.mxu0 %v1758_v21  ;;  %1457 = vmatpush3.bf16.msra.mxu1 %v1591_v34 }
 0x11a   :  { %1458 = vmatprep.subr.bf16.mxu1 %v1758_v21 }
 0x11c   :  { %1439 = vmatpush3.bf16.msra.mxu0 %v1584_v27 }
 0x11d   :  { %1440 = vmatprep.subr.bf16.mxu0 %v1758_v21  ;;  %1459 = vmatpush3.bf16.msra.mxu1 %v1592_v62 }
 0x11e   :  { %1460 = vmatprep.subr.bf16.mxu1 %v1758_v21 }
 0x120   :  { %1441 = vmatpush3.bf16.msra.mxu0 %v1585_v28 }
 0x121   :  { %1466 = vmatprep.subr.bf16.mxu0 %v1758_v21  ;;  %1461 = vmatpush3.bf16.msra.mxu1 %v1593_v63 }
 0x1b5   :  { %v1349_v35 = vpop.f32.mrb[0].mxu1 }
 0x1b6   :  { %v1327_v36 = vpop.f32.mrb[0].mxu0  ;;  %v1350_v37 = vpop.f32.mrb[1].mxu1 }
 0x1b7   :  { %v1328_v39 = vpop.f32.mrb[1].mxu0  ;;  %v1351_v40 = vadd.f32 %v1350_v37, %v1349_v35  ;;  %v1352_v41 = vpop.f32.mrb[2].mxu1 }
 0x1b8   :  { %v1329_v42 = vadd.f32 %v1328_v39, %v1327_v36  ;;  %v1330_v43 = vpop.f32.mrb[2].mxu0  ;;  %v1353_v44 = vpop.f32.mrb[3].mxu1 }
 0x1b9   :  { %v1331_v45 = vpop.f32.mrb[3].mxu0 }
 0x1ba   :  { %v713_v46 = vadd.f32 %v1329_v42, %v1203_v38 }
 0x1bc   :  { %v753_v47 = vadd.f32 %v1351_v40, %v713_v46 }
 0x1d5   :  { %v1393_v48 = vpop.f32.mrb[4].mxu1 }
 0x1d6   :  { %v1371_v49 = vpop.f32.mrb[4].mxu0  ;;  %v1394_v50 = vpop.f32.mrb[5].mxu1 }
 0x1d7   :  { %v1372_v51 = vpop.f32.mrb[5].mxu0  ;;  %v1395_v52 = vadd.f32 %v1394_v50, %v1393_v48  ;;  %v1396_v53 = vpop.f32.mrb[6].mxu1 }
 0x1d8   :  { %v1373_v54 = vadd.f32 %v1372_v51, %v1371_v49  ;;  %v1374_v55 = vpop.f32.mrb[6].mxu0  ;;  %v1397_v56 = vpop.f32.mrb[7].mxu1 }
 0x1d9   :  { %v1375_v57 = vpop.f32.mrb[7].mxu0 }
 0x1da   :  { %v793_v58 = vadd.f32 %v1373_v54, %v753_v47 }
 0x1dc   :  { %v833_v59 = vadd.f32 %v1395_v52, %v793_v58 }
 0x1de   :  { %v838_v60 = vmax.f32 %v833_v59, 0.0 }
 0x1e0   :  { %v839_v61 = vpack.c.bf16 %v838_v60, %v838_v60 }
 0x1e2   :  { %1443 = vmatmul.mubr.bf16.vlgmr.msra.gmra.mrb[8].mxu0 %v839_v61 }
 0x1e3   :  { %1482 = vmatprep.mubr.msk.bf16.mxu0 %vm1759_vm0, %v1758_v21  ;;  %1467 = vmatpush3.bf16.msra.mxu0 %v1594_v0 }
 0x1e4   :  { %1468 = vmatprep.subr.bf16.mxu0 %v1758_v21 }
 0x1e7   :  { %1469 = vmatpush3.bf16.msra.mxu0 %v1595_v1 }
 0x1e8   :  { %1470 = vmatprep.subr.bf16.mxu0 %v1758_v21 }
 0x1eb   :  { %1471 = vmatpush3.bf16.msra.mxu0 %v1596_v2 }
 0x1ec   :  { %1472 = vmatprep.subr.bf16.mxu0 %v1758_v21 }
 0x1ef   :  { %1473 = vmatpush3.bf16.msra.mxu0 %v1597_v3 }
 0x1f0   :  { %1474 = vmatprep.subr.bf16.mxu0 %v1758_v21 }
 0x1f3   :  { %1475 = vmatpush3.bf16.msra.mxu0 %v1598_v4 }
 0x1f4   :  { %1476 = vmatprep.subr.bf16.mxu0 %v1758_v21 }
 0x1f7   :  { %1477 = vmatpush3.bf16.msra.mxu0 %v1599_v5 }
 0x1f8   :  { %1478 = vmatprep.subr.bf16.mxu0 %v1758_v21 }
 0x1fb   :  { %1479 = vmatpush3.bf16.msra.mxu0 %v1600_v14 }
 0x1fc   :  { %1480 = vmatprep.subr.bf16.mxu0 %v1758_v21 }
 0x1ff   :  { %1481 = vmatpush3.bf16.msra.mxu0 %v1601_v15 }
 0x2b5   :  { %v945_v7 = vpop.f32.mrb[8].mxu0 }
 0x2b6   :  { %v946_v8 = vadd.f32 %v1284_v6, %v945_v7  ;;  %v1444_v9 = vpop.f32.mrb[9].mxu0 }
 0x2b7   :  { %v948_v10 = vpop.f32.mrb[10].mxu0 }
 0x2b8   :  { %v951_v11 = vmax.f32 %v946_v8, 0.0  ;;  %v1445_v12 = vpop.f32.mrb[11].mxu0 }
 0x2ba   :  { %v952_v13 = vpack.c.bf16 %v951_v11, %v951_v11 }
 0x2bc   :  { %1463 = vmatmul.mubr.bf16.vlgmr.msra.gmra.mrb[8].mxu1 %v952_v13 }
 0x38f   :  { %v1058_v17 = vpop.f32.mrb[8].mxu1 }
 0x390   :  { %v1059_v18 = vadd.f32 %v1293_v16, %v1058_v17  ;;  %v1464_v19 = vpop.f32.mrb[9].mxu1 }
 0x391   :  { %v1061_v20 = vpop.f32.mrb[10].mxu1 }
 0x392   :  { %v1064_v22 = vmax.f32 %v1059_v18, 0.0  ;;  %v1465_v23 = vpop.f32.mrb[11].mxu1 }
 0x394   :  { %v1065_v24 = vpack.c.bf16 %v1064_v22, %v1064_v22 }
 0x396   :  { %1483 = vmatmul.mubr.bf16.vlgmr.msra.gmra.mrb[12].mxu0 %v1065_v24 }
 0x469   :  { %v1171_v21 = vpop.f32.mrb[12].mxu0 }
 0x46a   :  { %v1172_v26 = vadd.f32 %v1302_v25, %v1171_v21  ;;  %v1484_v27 = vpop.f32.mrb[13].mxu0 }
 0x46b   :  { %v1174_v28 = vpop.f32.mrb[14].mxu0 }
 0x46c   :  { %1177 = vst [vmem:[#allocation11] sm:$0xff] %v1172_v26  ;;  %v1485_v29 = vpop.f32.mrb[15].mxu0 }
 0x46d   :  { %1723 = shalt.err (!%p1720_p2)
}
 0x46e   :  { %s1724_s8 = scalar_lea.hbm %s1964_s9, 128 }
 0x46f   :  { %p1725_p3 = scmp.ne.s32.totalorder %s1964_s9, %s1724_s8  ;;  %p1728_p4 = scmp.lt.u32.totalorder %s1724_s8, %s1964_s9 }
 0x471   :  { %p1730_p5 = pnand %p1728_p4, %p1725_p3 }
 0x473   :  { %1733 = shalt.err (!%p1730_p5)
}
 0x474   :  { %1187 = dma.vmem_to_hbm [thread:$0]  %s1185_s12, 128, %s1964_s9, [#allocation4]  }
 0x475   :  { %1740 = dma.done.wait [#allocation4], 128  }
 0x476   :  { %1741 = vsyncadd [#allocation4], 4294967168 }
 0x477   :  { %1191 = vsyncpa [#allocation3], 1 }
 0x478   :  { %1192 = vsyncpa [#allocation6], 1 }
 0x479   :  { %1193 = vsyncpa [#allocation9], 1 }
 0x47a   :  { %1194 = vsyncpa [#allocation4], 1 }

</bundles_post_ra>
